<compile_context>
chip_gen: v7x
topology: tpu7x:2x2x1
jax: 0.10.0
libtpu: 0.0.40
codegen_flags: <defaults>
</compile_context>

<pallas_src>
import functools

import jax
import jax.numpy as jnp
from jax.experimental import pallas as pl
from jax.experimental.pallas import tpu as pltpu


def _round_up(v, m):
    return ((v + m - 1) // m) * m


def _class_head_kernel(x_ref, w_ref, b_ref, o_ref):
    # x_ref: (1, C, TW)   w_ref: (OC, C)   b_ref: (OC, 1)   o_ref: (1, OC, TW)
    acc = jnp.dot(w_ref[...], x_ref[0],
                  preferred_element_type=jnp.float32)      # (OC, TW) f32
    acc = acc + b_ref[...].astype(jnp.float32)             # broadcast over TW
    o_ref[0] = jax.nn.sigmoid(acc)                         # == conv(x).float().sigmoid()


@functools.partial(jax.jit, static_argnames=("tile_w",))
def retinaface_class_head(x, weight, bias, *, tile_w=2048):
    """x: (N, C, H, W) NCHW. weight: (OC, C, 1, 1). bias: (OC,).

    Returns sigmoid(conv1x1(x)).float() as float32 with shape (N, OC, H, W).
    """
    n, c, h, w = x.shape
    oc = weight.shape[0]
    hw = h * w

    # Lane-aligned tile along the flattened spatial dim; pad (instead of
    # asserting) when H*W is not a multiple of the tile.
    tile_w = min(tile_w, _round_up(hw, 128))
    hw_pad = _round_up(hw, tile_w)

    x3d = x.reshape(n, c, hw)                  # free: NCHW is contiguous in HW
    if hw_pad != hw:
        x3d = jnp.pad(x3d, ((0, 0), (0, 0), (0, hw_pad - hw)))

    w2d = weight.reshape(oc, c)                # (OC, C)
    b2d = bias.reshape(oc, 1)                  # (OC, 1) -> broadcasts over TW

    grid = (n, hw_pad // tile_w)

    out3d = pl.pallas_call(
        _class_head_kernel,
        out_shape=jax.ShapeDtypeStruct((n, oc, hw_pad), jnp.float32),
        grid_spec=pltpu.PrefetchScalarGridSpec(
            num_scalar_prefetch=0,
            grid=grid,
            in_specs=[
                pl.BlockSpec((1, c, tile_w), lambda i, j: (i, 0, j)),
                pl.BlockSpec((oc, c), lambda i, j: (0, 0)),   # resident weight
                pl.BlockSpec((oc, 1), lambda i, j: (0, 0)),   # resident bias
            ],
            out_specs=pl.BlockSpec((1, oc, tile_w), lambda i, j: (i, 0, j)),
        ),
        compiler_params=pltpu.CompilerParams(
            dimension_semantics=("parallel", "parallel")),
    )(x3d, w2d, b2d)

    if hw_pad != hw:
        out3d = out3d[:, :, :hw]
    return out3d.reshape(n, oc, h, w)


def _reference(x, weight, bias):
    # Pure-JAX reference: 1x1 conv == einsum over channels, then sigmoid.
    y = jnp.einsum("nchw,oc->nohw", x, weight.reshape(weight.shape[0], -1))
    y = y + bias[None, :, None, None]
    return jax.nn.sigmoid(y.astype(jnp.float32))


if __name__ == "__main__":
    key = jax.random.PRNGKey(0)
    kx, kw, kb, kx2 = jax.random.split(key, 4)

    # Small shapes consistent with the module: inplanes=32 channels, anchor_num=3.
    N, C, H, W = 2, 32, 16, 16
    ANCHOR_NUM = 3
    OC = ANCHOR_NUM * 1

    x = jax.random.normal(kx, (N, C, H, W), dtype=jnp.float32)
    # Deterministic synthetic parameters (no checkpoint load).
    weight = jax.random.normal(kw, (OC, C, 1, 1), dtype=jnp.float32) * 0.05
    bias = jax.random.normal(kb, (OC,), dtype=jnp.float32) * 0.01

    out = jax.block_until_ready(retinaface_class_head(x, weight, bias))
    ref = _reference(x, weight, bias)
    assert out.shape == (N, OC, H, W)
    assert out.dtype == jnp.float32
    assert jnp.allclose(out, ref, atol=1e-5, rtol=1e-5)

    # Non-128-divisible spatial extent exercises the padding / partial-tile path.
    x2 = jax.random.normal(kx2, (N, C, 10, 10), dtype=jnp.float32)
    out2 = jax.block_until_ready(retinaface_class_head(x2, weight, bias))
    ref2 = _reference(x2, weight, bias)
    assert out2.shape == (N, OC, 10, 10)
    assert jnp.allclose(out2, ref2, atol=1e-5, rtol=1e-5)

    print("KERNEL_OK")
</pallas_src>

<mosaic_0001>
module attributes {stable_mosaic.version = 11 : i64} {
  func.func @_class_head_kernel(%arg0: i32, %arg1: i32, %arg2: memref<1x32x256xf32, #tpu.memory_space<vmem>>, %arg3: memref<3x32xf32, #tpu.memory_space<vmem>>, %arg4: memref<3x1xf32, #tpu.memory_space<vmem>>, %arg5: memref<1x3x256xf32, #tpu.memory_space<vmem>>) attributes {dimension_semantics = [#tpu.dimension_semantics<parallel>, #tpu.dimension_semantics<parallel>], iteration_bounds = array<i64: 2, 1>, scalar_prefetch = 0 : i64, scratch_operands = 0 : i64, tpu.core_type = #tpu.core_type<tc>, window_params = [{transform_indices = @transform_0, window_bounds = array<i64: 1, 32, 256>}, {pipeline_mode = #tpu.pipeline_mode<synchronous>, transform_indices = @transform_1, window_bounds = array<i64: 3, 32>}, {pipeline_mode = #tpu.pipeline_mode<synchronous>, transform_indices = @transform_2, window_bounds = array<i64: 3, 1>}, {transform_indices = @transform_3, window_bounds = array<i64: 1, 3, 256>}]} {
    %c0 = arith.constant 0 : index
    %c0_0 = arith.constant 0 : index
    %0 = vector.load %arg3[%c0, %c0_0] : memref<3x32xf32, #tpu.memory_space<vmem>>, vector<3x32xf32>
    %c0_1 = arith.constant 0 : index
    %c0_2 = arith.constant 0 : index
    %c0_3 = arith.constant 0 : index
    %1 = vector.load %arg2[%c0_1, %c0_2, %c0_3] : memref<1x32x256xf32, #tpu.memory_space<vmem>>, vector<1x32x256xf32>
    %2 = vector.shape_cast %1 : vector<1x32x256xf32> to vector<32x256xf32>
    %cst = arith.constant dense<0.000000e+00> : vector<3x256xf32>
    %3 = tpu.matmul %0, %2, %cst {dimension_numbers = #tpu.dot_dimension_numbers<[1], [0], [0], [1], [0, 0, 1, 1], [], []>} : vector<3x32xf32>, vector<32x256xf32>, vector<3x256xf32> -> vector<3x256xf32>
    %c0_4 = arith.constant 0 : index
    %c0_5 = arith.constant 0 : index
    %4 = vector.load %arg4[%c0_4, %c0_5] : memref<3x1xf32, #tpu.memory_space<vmem>>, vector<3x1xf32>
    %5 = vector.broadcast %4 : vector<3x1xf32> to vector<3x256xf32>
    %6 = arith.addf %3, %5 : vector<3x256xf32>
    %7 = arith.negf %6 : vector<3x256xf32>
    %8 = math.exp %7 : vector<3x256xf32>
    %cst_6 = arith.constant 1.000000e+00 : f32
    %9 = vector.broadcast %cst_6 : f32 to vector<3x256xf32>
    %10 = arith.addf %9, %8 : vector<3x256xf32>
    %11 = arith.divf %9, %10 : vector<3x256xf32>
    %c0_7 = arith.constant 0 : index
    %c0_8 = arith.constant 0 : index
    %c0_9 = arith.constant 0 : index
    %12 = vector.load %arg5[%c0_7, %c0_8, %c0_9] : memref<1x3x256xf32, #tpu.memory_space<vmem>>, vector<1x3x256xf32>
    %13 = vector.shape_cast %12 : vector<1x3x256xf32> to vector<3x256xf32>
    %14 = vector.shape_cast %11 : vector<3x256xf32> to vector<1x3x256xf32>
    tpu.vector_store %arg5[%c0_7, %c0_8, %c0_9], %14 {strides = array<i32>} : memref<1x3x256xf32, #tpu.memory_space<vmem>>, vector<1x3x256xf32>,
    return
  }
  func.func @transform_0(%arg0: i32, %arg1: i32) -> (i32, i32, i32) {
    %c0_i32 = arith.constant 0 : i32
    %c0_i32_0 = arith.constant 0 : i32
    return %arg0, %c0_i32, %arg1 : i32, i32, i32
  }
  func.func @transform_1(%arg0: i32, %arg1: i32) -> (i32, i32) {
    %c0_i32 = arith.constant 0 : i32
    %c0_i32_0 = arith.constant 0 : i32
    %c0_i32_1 = arith.constant 0 : i32
    return %c0_i32, %c0_i32_0 : i32, i32
  }
  func.func @transform_2(%arg0: i32, %arg1: i32) -> (i32, i32) {
    %c0_i32 = arith.constant 0 : i32
    %c0_i32_0 = arith.constant 0 : i32
    %c0_i32_1 = arith.constant 0 : i32
    return %c0_i32, %c0_i32_0 : i32, i32
  }
  func.func @transform_3(%arg0: i32, %arg1: i32) -> (i32, i32, i32) {
    %c0_i32 = arith.constant 0 : i32
    %c0_i32_0 = arith.constant 0 : i32
    return %arg0, %c0_i32, %arg1 : i32, i32, i32
  }
}

</mosaic_0001>

<bundles_post_ra>
// kernel: retinaface_class_head.1
= control target key start
LH: loop header
LB: loop body
LE: loop exit
PB: predicated region body
PF: predicated region fallthrough
CT: control target
= control target key end

     0   :  { %s509_s12 = smov 0   ;;  %s511_s13 = smov 0   ;;  %s552_s0 = inlined_call_operand.vmem [shape: f32[2,32,256], index: 0, kind: input, shape index: {}]   ;;  %s553_s1 = inlined_call_operand.vmem [shape: f32[3,32], index: 1, kind: input, shape index: {}]   ;;  %s554_s2 = inlined_call_operand.vmem [shape: f32[3,1], index: 2, kind: input, shape index: {}]   ;;  %s555_s3 = inlined_call_operand.vmem [shape: f32[2,3,256], index: 3, kind: output, shape index: {}]  }
   0x1   :  { %s513_s14 = smov 0  }
   0x2 LB: > { %s25_s15 = sadd.s32 1, %s481_s13  ;;  %p408_p0 = scmp.ge.s32.totalorder %s485_s14, 1  ;;  %s485_s14 = sphi %s513_s14, %s13_s14   ;;  %s481_s13 = sphi %s511_s13, %s557_s13   ;;  %s477_s12 = sphi %s509_s12, %s556_s12  }
   0x3   : > { %p27_p1 = scmp.ge.s32.totalorder %s25_s15, 2  ;;  %p158_p2 = scmp.lt.s32.totalorder %s485_s14, 3 }
   0x5   : > { %s559_s15 = smov (%p27_p1, %s25_s15), 0  ;;  %p159_p3 = pnand %p408_p0, %p158_p2 }
   0x6   : > { %p191_p4 = scmp.lt.s32.totalorder (!%p159_p3), %s477_s12, 1  ;;  %v487_v0 = vmov (!%p159_p3), 0.0   ;;  %v488_v1 = vmov (!%p159_p3), 0   ;;  %v219_v2 = vld [vmem:[%s554_s2] sm:$0x7] (!%p159_p3)  ;;  %vm225_vm0 = vcmask (!%p159_p3), 261120  }
   0x7   : > { %162 = sbr.rel (%p159_p3) target bundleno = 272 (0x110), region = 32  ;;  %293 = vmatprep.mubr.f32.mxu0 (!%p159_p3), %v487_v0  ;;  %454 = vset.pattern.permute.xlu0 (!%p159_p3), %v488_v1  ;;  %v210_v15 = vld [vmem:[%s553_s1] sm:$0x7] (!%p159_p3) }
   0x8   : > { %222 = vperm.xlu0 (!%p159_p3), %454, %v219_v2  }
   0xe   : > { %s561_s12 = smov (!%p191_p4, %s477_s12), 1 }
   0xf   : > { %s418_s18 = sshll.u32 %s561_s12, 6  ;;  %s419_s24 = sshll.u32 %s561_s12, 3 }
  0x10   : > { %s198_s21 = scalar_lea.vmem %s552_s0, %s418_s18  ;;  %s208_s27 = scalar_lea.vmem %s555_s3, %s419_s24 }
  0x11   : > { %v212_v3 = vld [vmem:[%s198_s21 + $0x8] sm:$0xff]  ;;  %v214_v4 = vld [vmem:[%s198_s21 + $0x18] sm:$0xff]  ;;  %v211_v5 = vld [vmem:[%s198_s21] sm:$0xff] }
  0x12   : > { %v420_v6 = vpack.c.bf16 %v214_v4, %v212_v3  ;;  %v213_v7 = vld [vmem:[%s198_s21 + $0x10] sm:$0xff]  ;;  %v216_v8 = vld [vmem:[%s198_s21 + $0x28] sm:$0xff]  ;;  %v218_v9 = vld [vmem:[%s198_s21 + $0x38] sm:$0xff] }
  0x13   : > { %v422_v10 = vpack.c.bf16 %v213_v7, %v211_v5  ;;  %v424_v11 = vpack.c.bf16 %v218_v9, %v216_v8  ;;  %v215_v12 = vld [vmem:[%s198_s21 + $0x20] sm:$0xff]  ;;  %v217_v13 = vld [vmem:[%s198_s21 + $0x30] sm:$0xff] }
  0x14   : > { %421 = vmatprep.subr.bf16.mxu0 %v420_v6  ;;  %v426_v14 = vpack.c.bf16 %v217_v13, %v215_v12 }
  0x15   : > { %423 = vmatpush1.bf16.msra.mxu0 %v422_v10 }
  0x16   : > { %425 = vmatprep.subr.bf16.mxu0 %v424_v11 }
  0x19   : > { %427 = vmatpush1.bf16.msra.mxu0 %v426_v14 }
  0x1c   : > { %413 = vmatmul.mubr.msk.f32.vlgmr.msra.gmra.mrb[0].mxu0 %vm225_vm0, %v210_v15 }
  0x87   : > { %v223_v16 = vpop.permute.xlu0 %222 }
  0xef   : > { %v295_v17 = vpop.f32.mrb[0].mxu0 }
  0xf0   : > { %v296_v18 = vadd.f32 %v295_v17, %v223_v16  ;;  %v297_v19 = vpop.f32.mrb[1].mxu0 }
  0xf1   : > { %v298_v20 = vadd.f32 %v297_v19, %v223_v16 }
  0xf2   : > { %v414_v21 = vmul.f32 -1.442695, %v296_v18 }
  0xf3   : > { %v415_v22 = vmul.f32 -1.442695, %v298_v20 }
  0xf4   : > { %455 = vpow2.f32 %v414_v21 }
  0xf5   : > { %457 = vpow2.f32 %v415_v22 }
  0xfe   : > { %v456_v23 = vpop.eup %455 }
  0xff   : > { %v458_v24 = vpop.eup %457  ;;  %v306_v25 = vadd.f32 1.0, %v456_v23 }
 0x100   : > { %v307_v26 = vadd.f32 1.0, %v458_v24 }
 0x101   : > { %459 = vrcp.f32 %v306_v25 }
 0x102   : > { %461 = vrcp.f32 %v307_v26 }
 0x10b   : > { %v460_v27 = vpop.eup %459 }
 0x10c   : > { %v462_v28 = vpop.eup %461 }
 0x10d   : > { %v314_v29 = vcombine.low %v460_v27, %v462_v28 }
 0x10f   : > { %316 = vst [vmem:[%s208_s27] sm:$0x77] %v314_v29 }
 0x110 PF: > { %s13_s14 = sadd.s32 1, %s485_s14   ;;  %s556_s12 = smov %s481_s13 }
 0x111   : > { %p10_p5 = scmp.ge.s32.totalorder %s13_s14, 4   ;;  %s557_s13 = smov %s559_s15 }
 0x113   :  { %12 = sbr.rel (!%p10_p5) target bundleno = 2 (0x2), region = 62 }

</bundles_post_ra>
